<compile_context>
chip_gen: v5e
topology: v5e:2x2
jax: 0.10.0
libtpu: 0.0.40
codegen_flags: <defaults>
</compile_context>

<pallas_src>
import functools
import math

import numpy as np
import jax
import jax.numpy as jnp
from jax.experimental import pallas as pl
from jax.experimental.pallas import tpu as pltpu


def _attention_kernel(*refs, with_mask, mxu_dtype):
    """One grid step: (batch-group b, q-tile qi, k-tile ki).

    The ki axis is the softmax reduction; q-projection + running max/sum and
    the output accumulator persist in VMEM scratch across it.
    """
    if with_mask:
        (q_ref, k_ref, v_ref, m_ref, w_ref, b_ref, o_ref,
         qp_sc, m_sc, l_sc, acc_sc) = refs
    else:
        (q_ref, k_ref, v_ref, w_ref, b_ref, o_ref,
         qp_sc, m_sc, l_sc, acc_sc) = refs
        m_ref = None

    nb, tq, n_units = q_ref.shape
    tk = k_ref.shape[1]
    d_out = w_ref.shape[-1]
    ki = pl.program_id(2)

    @pl.when(ki == 0)
    def _init():
        # Project Q once per (batch-group, q-tile).  The 1/sqrt(d_k) scale is
        # folded into Wq/bq in the wrapper, so scores need no extra scaling.
        q2 = q_ref[...].reshape(nb * tq, n_units)
        q_p = jnp.dot(q2, w_ref[0], preferred_element_type=jnp.float32) + b_ref[0]
        qp_sc[...] = q_p.reshape(nb, tq, d_out).astype(mxu_dtype)
        m_sc[...] = jnp.full(m_sc.shape, -jnp.inf, dtype=m_sc.dtype)
        l_sc[...] = jnp.zeros(l_sc.shape, dtype=l_sc.dtype)
        acc_sc[...] = jnp.zeros(acc_sc.shape, dtype=acc_sc.dtype)

    # K / V projections for this key tile (f32 accumulation, operands cast to
    # the MXU dtype for the attention matmuls).
    k2 = k_ref[...].reshape(nb * tk, n_units)
    v2 = v_ref[...].reshape(nb * tk, n_units)
    k_p = (jnp.dot(k2, w_ref[1], preferred_element_type=jnp.float32)
           + b_ref[1]).reshape(nb, tk, d_out).astype(mxu_dtype)
    v_p = (jnp.dot(v2, w_ref[2], preferred_element_type=jnp.float32)
           + b_ref[2]).reshape(nb, tk, d_out).astype(mxu_dtype)

    # Scores for this (q-tile, k-tile); scale already folded into q_p.
    s = jnp.einsum('bqd,bkd->bqk', qp_sc[...], k_p,
                   preferred_element_type=jnp.float32)

    if m_ref is not None:
        # Single select instead of scores*m - 1e9*(1-m); identical for 0/1 masks.
        s = jnp.where(m_ref[...] != 0, s, -1e9)

    # Online (flash-style) softmax update.
    m_new = jnp.maximum(m_sc[...], jnp.max(s, axis=-1, keepdims=True))
    alpha = jnp.exp(m_sc[...] - m_new)
    p = jnp.exp(s - m_new)
    l_sc[...] = alpha * l_sc[...] + jnp.sum(p, axis=-1, keepdims=True)
    acc_sc[...] = alpha * acc_sc[...] + jnp.einsum(
        'bqk,bkd->bqd', p.astype(mxu_dtype), v_p,
        preferred_element_type=jnp.float32)
    m_sc[...] = m_new

    # TODO(synk): training-mode dropout on the attention probabilities is not
    # implemented (eval-mode identity); it would mask the unnormalized `p`
    # with pltpu.prng_seed + pltpu.stateful_bernoulli.

    @pl.when(ki == pl.num_programs(2) - 1)
    def _finalize():
        # Deferred softmax normalization: one reciprocal per row applied to the
        # (tq, d_k) accumulator instead of normalizing (tq, Sk) probabilities.
        inv_l = 1.0 / l_sc[...]
        o_ref[...] = (acc_sc[...] * inv_l).astype(o_ref.dtype)


def _pick_tile(dim, candidates):
    for c in candidates:
        if dim % c == 0:
            return c
    return dim


def single_attention(Q, K, V, wq, wk, wv, bq, bk, bv, mask=None, *,
                     mxu_dtype=jnp.float32):
    """SingleAttention.forward (eval mode) as a single fused Pallas TPU kernel.

    Q: (B, Sq, n_units); K, V: (B, Sk, n_units).
    wq/wk/wv in PyTorch nn.Linear layout (d_k, n_units); bq/bk/bv: (d_k,).
    mask: None, (Sq, Sk) or (B, Sq, Sk), 0/1 valued.
    mxu_dtype: matmul-operand dtype (jnp.bfloat16 recommended on v6e/v7x);
    accumulation, bias adds and all softmax math stay float32.
    """
    B, Sq, n_units = Q.shape
    Sk = K.shape[1]
    d_k = wq.shape[0]
    out_dtype = Q.dtype

    # ---- tile selection (bounded VMEM, MXU fill, >1 parallel step when big) --
    tq = Sq if Sq <= 256 else _pick_tile(Sq, (256, 128, 64, 32, 16, 8))
    tk = Sk if Sk <= 512 else _pick_tile(Sk, (512, 256, 128, 64, 32, 16, 8))
    nb = 1
    for cand in range(B, 0, -1):          # fold batch to amortize step overhead
        if B % cand == 0 and cand * tq <= 512 and (cand == 1 or tq % 8 == 0):
            nb = cand
            break
    grid = (B // nb, Sq // tq, Sk // tk)

    # ---- parameter packing (scale folded into Wq / bq) ----------------------
    scale = 1.0 / math.sqrt(d_k)
    w_all = jnp.stack([jnp.transpose(wq) * scale,
                       jnp.transpose(wk),
                       jnp.transpose(wv)]).astype(mxu_dtype)        # (3, n_units, d_k)
    b_all = jnp.stack([bq * scale, bk, bv]).reshape(3, 1, d_k).astype(jnp.float32)

    q_in = Q.astype(mxu_dtype)
    k_in = K.astype(mxu_dtype)
    v_in = V.astype(mxu_dtype)

    with_mask = mask is not None
    if with_mask:
        m = jnp.asarray(mask)
        if m.ndim == 2:                   # PyTorch-style broadcast of (Sq, Sk)
            m = jnp.broadcast_to(m, (B, Sq, Sk))
        m = (m != 0).astype(jnp.int8)     # 4x fewer HBM bytes than f32 mask

    in_specs = [
        pl.BlockSpec((nb, tq, n_units), lambda b, qi, ki: (b, qi, 0)),   # Q
        pl.BlockSpec((nb, tk, n_units), lambda b, qi, ki: (b, ki, 0)),   # K
        pl.BlockSpec((nb, tk, n_units), lambda b, qi, ki: (b, ki, 0)),   # V
    ]
    args = [q_in, k_in, v_in]
    if with_mask:
        in_specs.append(pl.BlockSpec((nb, tq, tk), lambda b, qi, ki: (b, qi, ki)))
        args.append(m)
    in_specs += [
        pl.BlockSpec((3, n_units, d_k), lambda b, qi, ki: (0, 0, 0)),    # stacked W^T
        pl.BlockSpec((3, 1, d_k), lambda b, qi, ki: (0, 0, 0)),          # stacked biases
    ]
    args += [w_all, b_all]

    out_spec = pl.BlockSpec((nb, tq, d_k), lambda b, qi, ki: (b, qi, 0))

    scratch_shapes = [
        pltpu.VMEM((nb, tq, d_k), mxu_dtype),    # projected / scaled Q tile
        pltpu.VMEM((nb, tq, 1), jnp.float32),    # running max
        pltpu.VMEM((nb, tq, 1), jnp.float32),    # running sum
        pltpu.VMEM((nb, tq, d_k), jnp.float32),  # output accumulator
    ]

    # ---- VMEM budget + cost estimate ----------------------------------------
    ib = jnp.dtype(mxu_dtype).itemsize
    ob = jnp.dtype(out_dtype).itemsize
    est = (2 * nb * tq * n_units * ib            # Q block, double-buffered
           + 4 * nb * tk * n_units * ib          # K + V blocks
           + 2 * 3 * n_units * d_k * ib          # stacked weights
           + 2 * 3 * d_k * 4                     # stacked biases
           + 2 * nb * tq * d_k * ob              # output block
           + nb * tq * d_k * (ib + 4)            # q_p + accumulator scratch
           + 4 * nb * tq * tk * 4)               # live scores / probs
    if with_mask:
        est += 2 * nb * tq * tk
    vmem_limit = int(min(max(2 * est, 32 * 1024 * 1024), 64 * 1024 * 1024))

    flops = (2 * B * Sq * n_units * d_k          # Q projection
             + 4 * B * Sk * n_units * d_k        # K and V projections
             + 4 * B * Sq * Sk * d_k)            # scores + attn @ V
    bytes_accessed = int(sum(int(x.size) * x.dtype.itemsize for x in args)
                         + B * Sq * d_k * ob)
    cost = pl.CostEstimate(flops=int(flops),
                           transcendentals=int(B * Sq * Sk),
                           bytes_accessed=bytes_accessed)

    kernel = functools.partial(_attention_kernel, with_mask=with_mask,
                               mxu_dtype=mxu_dtype)
    return pl.pallas_call(
        kernel,
        out_shape=jax.ShapeDtypeStruct((B, Sq, d_k), out_dtype),
        grid=grid,
        in_specs=in_specs,
        out_specs=out_spec,
        scratch_shapes=scratch_shapes,
        compiler_params=pltpu.CompilerParams(
            dimension_semantics=("parallel", "parallel", "arbitrary"),
            vmem_limit_bytes=vmem_limit),
        cost_estimate=cost,
    )(*args)


if __name__ == "__main__":
    # Small shapes consistent with the module's forward.
    B, S, N_UNITS, D_K = 2, 16, 32, 32

    key = jax.random.PRNGKey(0)
    kq, kk, kv, kwq, kwk, kwv, kbq, kbk, kbv = jax.random.split(key, 9)

    # Deterministic parameter init mirroring init_weights_uniform:
    # uniform(-k, k) with k = sqrt(1 / n_units); Linear layout (d_k, n_units).
    kscale = float(np.sqrt(1.0 / N_UNITS))
    wq = jax.random.uniform(kwq, (D_K, N_UNITS), minval=-kscale, maxval=kscale, dtype=jnp.float32)
    wk = jax.random.uniform(kwk, (D_K, N_UNITS), minval=-kscale, maxval=kscale, dtype=jnp.float32)
    wv = jax.random.uniform(kwv, (D_K, N_UNITS), minval=-kscale, maxval=kscale, dtype=jnp.float32)
    bq = jax.random.uniform(kbq, (D_K,), minval=-kscale, maxval=kscale, dtype=jnp.float32)
    bk = jax.random.uniform(kbk, (D_K,), minval=-kscale, maxval=kscale, dtype=jnp.float32)
    bv = jax.random.uniform(kbv, (D_K,), minval=-kscale, maxval=kscale, dtype=jnp.float32)

    Q = jax.random.normal(kq, (B, S, N_UNITS), dtype=jnp.float32)
    K = jax.random.normal(kk, (B, S, N_UNITS), dtype=jnp.float32)
    V = jax.random.normal(kv, (B, S, N_UNITS), dtype=jnp.float32)

    def reference(Q, K, V, mask=None):
        Qp = Q @ wq.T + bq
        Kp = K @ wk.T + bk
        Vp = V @ wv.T + bv
        scores = jnp.einsum('bik,bjk->bij', Qp, Kp) / np.sqrt(D_K)
        if mask is not None:
            m = mask.astype(jnp.float32)
            scores = scores * m - 1e9 * (1.0 - m)
        attn = jax.nn.softmax(scores, axis=-1)
        return jnp.einsum('bij,bjk->bik', attn, Vp)

    causal = jnp.tril(jnp.ones((S, S), jnp.float32))
    mask = jnp.broadcast_to(causal, (B, S, S))

    # Exact-precision path (f32 MXU operands): strict parity with the reference.
    out = jax.block_until_ready(single_attention(Q, K, V, wq, wk, wv, bq, bk, bv))
    np.testing.assert_allclose(np.asarray(out), np.asarray(reference(Q, K, V)),
                               rtol=1e-5, atol=1e-5)

    out_m = jax.block_until_ready(
        single_attention(Q, K, V, wq, wk, wv, bq, bk, bv, mask=mask))
    np.testing.assert_allclose(np.asarray(out_m),
                               np.asarray(reference(Q, K, V, mask)),
                               rtol=1e-5, atol=1e-5)

    # Fast path for v6e/v7x: bf16 MXU operands, f32 accumulation + softmax.
    out_bf = jax.block_until_ready(
        single_attention(Q, K, V, wq, wk, wv, bq, bk, bv, mask=mask,
                         mxu_dtype=jnp.bfloat16))
    np.testing.assert_allclose(np.asarray(out_bf),
                               np.asarray(reference(Q, K, V, mask)),
                               rtol=3e-2, atol=3e-2)

    print("KERNEL_OK")
</pallas_src>

<mosaic_0001>
module attributes {stable_mosaic.version = 11 : i64} {
  func.func @_attention_kernel(%arg0: i32, %arg1: i32, %arg2: i32, %arg3: memref<2x16x32xf32, #tpu.memory_space<vmem>>, %arg4: memref<2x16x32xf32, #tpu.memory_space<vmem>>, %arg5: memref<2x16x32xf32, #tpu.memory_space<vmem>>, %arg6: memref<3x32x32xf32, #tpu.memory_space<vmem>>, %arg7: memref<3x1x32xf32, #tpu.memory_space<vmem>>, %arg8: memref<2x16x32xf32, #tpu.memory_space<vmem>>, %arg9: memref<2x16x32xf32, #tpu.memory_space<vmem>>, %arg10: memref<2x16x1xf32, #tpu.memory_space<vmem>>, %arg11: memref<2x16x1xf32, #tpu.memory_space<vmem>>, %arg12: memref<2x16x32xf32, #tpu.memory_space<vmem>>) attributes {dimension_semantics = [#tpu.dimension_semantics<parallel>, #tpu.dimension_semantics<parallel>, #tpu.dimension_semantics<arbitrary>], iteration_bounds = array<i64: 1, 1, 1>, scalar_prefetch = 0 : i64, scratch_operands = 4 : i64, tpu.core_type = #tpu.core_type<tc>, window_params = [{transform_indices = @transform_0, window_bounds = array<i64: 2, 16, 32>}, {transform_indices = @transform_1, window_bounds = array<i64: 2, 16, 32>}, {transform_indices = @transform_2, window_bounds = array<i64: 2, 16, 32>}, {pipeline_mode = #tpu.pipeline_mode<synchronous>, transform_indices = @transform_3, window_bounds = array<i64: 3, 32, 32>}, {pipeline_mode = #tpu.pipeline_mode<synchronous>, transform_indices = @transform_4, window_bounds = array<i64: 3, 1, 32>}, {transform_indices = @transform_5, window_bounds = array<i64: 2, 16, 32>}]} {
    %c0_i32 = arith.constant 0 : i32
    %0 = arith.cmpi eq, %arg2, %c0_i32 : i32
    %1 = arith.extui %0 : i1 to i32
    %c0_i32_0 = arith.constant 0 : i32
    %2 = arith.cmpi ne, %1, %c0_i32_0 : i32
    scf.if %2 {
      %c0_47 = arith.constant 0 : index
      %c0_48 = arith.constant 0 : index
      %c0_49 = arith.constant 0 : index
      %51 = vector.load %arg3[%c0_47, %c0_48, %c0_49] : memref<2x16x32xf32, #tpu.memory_space<vmem>>, vector<2x16x32xf32>
      %52 = vector.shape_cast %51 : vector<2x16x32xf32> to vector<32x32xf32>
      %c0_50 = arith.constant 0 : index
      %c0_51 = arith.constant 0 : index
      %c0_52 = arith.constant 0 : index
      %53 = vector.load %arg6[%c0_50, %c0_51, %c0_52] : memref<3x32x32xf32, #tpu.memory_space<vmem>>, vector<1x32x32xf32>
      %54 = vector.shape_cast %53 : vector<1x32x32xf32> to vector<32x32xf32>
      %cst_53 = arith.constant dense<0.000000e+00> : vector<32x32xf32>
      %55 = tpu.matmul %52, %54, %cst_53 {dimension_numbers = #tpu.dot_dimension_numbers<[1], [0], [0], [1], [0, 0, 1, 1], [], []>} : vector<32x32xf32>, vector<32x32xf32>, vector<32x32xf32> -> vector<32x32xf32>
      %c0_54 = arith.constant 0 : index
      %c0_55 = arith.constant 0 : index
      %c0_56 = arith.constant 0 : index
      %56 = vector.load %arg7[%c0_54, %c0_55, %c0_56] : memref<3x1x32xf32, #tpu.memory_space<vmem>>, vector<1x1x32xf32>
      %57 = vector.shape_cast %56 : vector<1x1x32xf32> to vector<1x32xf32>
      %58 = vector.broadcast %57 : vector<1x32xf32> to vector<32x32xf32>
      %59 = arith.addf %55, %58 : vector<32x32xf32>
      %60 = vector.shape_cast %59 : vector<32x32xf32> to vector<2x16x32xf32>
      %c0_57 = arith.constant 0 : index
      %c0_58 = arith.constant 0 : index
      %c0_59 = arith.constant 0 : index
      %61 = vector.load %arg9[%c0_57, %c0_58, %c0_59] : memref<2x16x32xf32, #tpu.memory_space<vmem>>, vector<2x16x32xf32>
      tpu.vector_store %arg9[%c0_57, %c0_58, %c0_59], %60 {strides = array<i32>} : memref<2x16x32xf32, #tpu.memory_space<vmem>>, vector<2x16x32xf32>,
      %cst_60 = arith.constant 0xFF800000 : f32
      %62 = vector.broadcast %cst_60 : f32 to vector<2x16x1xf32>
      %c0_61 = arith.constant 0 : index
      %c0_62 = arith.constant 0 : index
      %c0_63 = arith.constant 0 : index
      %63 = vector.load %arg10[%c0_61, %c0_62, %c0_63] : memref<2x16x1xf32, #tpu.memory_space<vmem>>, vector<2x16x1xf32>
      tpu.vector_store %arg10[%c0_61, %c0_62, %c0_63], %62 {strides = array<i32>} : memref<2x16x1xf32, #tpu.memory_space<vmem>>, vector<2x16x1xf32>,
      %cst_64 = arith.constant 0.000000e+00 : f32
      %64 = vector.broadcast %cst_64 : f32 to vector<2x16x1xf32>
      %c0_65 = arith.constant 0 : index
      %c0_66 = arith.constant 0 : index
      %c0_67 = arith.constant 0 : index
      %65 = vector.load %arg11[%c0_65, %c0_66, %c0_67] : memref<2x16x1xf32, #tpu.memory_space<vmem>>, vector<2x16x1xf32>
      tpu.vector_store %arg11[%c0_65, %c0_66, %c0_67], %64 {strides = array<i32>} : memref<2x16x1xf32, #tpu.memory_space<vmem>>, vector<2x16x1xf32>,
      %cst_68 = arith.constant 0.000000e+00 : f32
      %66 = vector.broadcast %cst_68 : f32 to vector<2x16x32xf32>
      %c0_69 = arith.constant 0 : index
      %c0_70 = arith.constant 0 : index
      %c0_71 = arith.constant 0 : index
      %67 = vector.load %arg12[%c0_69, %c0_70, %c0_71] : memref<2x16x32xf32, #tpu.memory_space<vmem>>, vector<2x16x32xf32>
      tpu.vector_store %arg12[%c0_69, %c0_70, %c0_71], %66 {strides = array<i32>} : memref<2x16x32xf32, #tpu.memory_space<vmem>>, vector<2x16x32xf32>,
    } else {
    }
    %c0 = arith.constant 0 : index
    %c0_1 = arith.constant 0 : index
    %c0_2 = arith.constant 0 : index
    %3 = vector.load %arg4[%c0, %c0_1, %c0_2] : memref<2x16x32xf32, #tpu.memory_space<vmem>>, vector<2x16x32xf32>
    %4 = vector.shape_cast %3 : vector<2x16x32xf32> to vector<32x32xf32>
    %c0_3 = arith.constant 0 : index
    %c0_4 = arith.constant 0 : index
    %c0_5 = arith.constant 0 : index
    %5 = vector.load %arg5[%c0_3, %c0_4, %c0_5] : memref<2x16x32xf32, #tpu.memory_space<vmem>>, vector<2x16x32xf32>
    %6 = vector.shape_cast %5 : vector<2x16x32xf32> to vector<32x32xf32>
    %c1 = arith.constant 1 : index
    %c0_6 = arith.constant 0 : index
    %c0_7 = arith.constant 0 : index
    %7 = vector.load %arg6[%c1, %c0_6, %c0_7] : memref<3x32x32xf32, #tpu.memory_space<vmem>>, vector<1x32x32xf32>
    %8 = vector.shape_cast %7 : vector<1x32x32xf32> to vector<32x32xf32>
    %cst = arith.constant dense<0.000000e+00> : vector<32x32xf32>
    %9 = tpu.matmul %4, %8, %cst {dimension_numbers = #tpu.dot_dimension_numbers<[1], [0], [0], [1], [0, 0, 1, 1], [], []>} : vector<32x32xf32>, vector<32x32xf32>, vector<32x32xf32> -> vector<32x32xf32>
    %c1_8 = arith.constant 1 : index
    %c0_9 = arith.constant 0 : index
    %c0_10 = arith.constant 0 : index
    %10 = vector.load %arg7[%c1_8, %c0_9, %c0_10] : memref<3x1x32xf32, #tpu.memory_space<vmem>>, vector<1x1x32xf32>
    %11 = vector.shape_cast %10 : vector<1x1x32xf32> to vector<1x32xf32>
    %12 = vector.broadcast %11 : vector<1x32xf32> to vector<32x32xf32>
    %13 = arith.addf %9, %12 : vector<32x32xf32>
    %14 = vector.shape_cast %13 : vector<32x32xf32> to vector<2x16x32xf32>
    %c2 = arith.constant 2 : index
    %c0_11 = arith.constant 0 : index
    %c0_12 = arith.constant 0 : index
    %15 = vector.load %arg6[%c2, %c0_11, %c0_12] : memref<3x32x32xf32, #tpu.memory_space<vmem>>, vector<1x32x32xf32>
    %16 = vector.shape_cast %15 : vector<1x32x32xf32> to vector<32x32xf32>
    %cst_13 = arith.constant dense<0.000000e+00> : vector<32x32xf32>
    %17 = tpu.matmul %6, %16, %cst_13 {dimension_numbers = #tpu.dot_dimension_numbers<[1], [0], [0], [1], [0, 0, 1, 1], [], []>} : vector<32x32xf32>, vector<32x32xf32>, vector<32x32xf32> -> vector<32x32xf32>
    %c2_14 = arith.constant 2 : index
    %c0_15 = arith.constant 0 : index
    %c0_16 = arith.constant 0 : index
    %18 = vector.load %arg7[%c2_14, %c0_15, %c0_16] : memref<3x1x32xf32, #tpu.memory_space<vmem>>, vector<1x1x32xf32>
    %19 = vector.shape_cast %18 : vector<1x1x32xf32> to vector<1x32xf32>
    %20 = vector.broadcast %19 : vector<1x32xf32> to vector<32x32xf32>
    %21 = arith.addf %17, %20 : vector<32x32xf32>
    %22 = vector.shape_cast %21 : vector<32x32xf32> to vector<2x16x32xf32>
    %c0_17 = arith.constant 0 : index
    %c0_18 = arith.constant 0 : index
    %c0_19 = arith.constant 0 : index
    %23 = vector.load %arg9[%c0_17, %c0_18, %c0_19] : memref<2x16x32xf32, #tpu.memory_space<vmem>>, vector<2x16x32xf32>
    "tpu.trace_start"() <{level = 10 : i32, message = "bqd,bkd->bqk"}> : () -> ()
    %cst_20 = arith.constant dense<0.000000e+00> : vector<2x16x16xf32>
    %24 = tpu.matmul %23, %14, %cst_20 {dimension_numbers = #tpu.dot_dimension_numbers<[2], [2], [1], [1], [0, 0, 0, 1, 1, 1], [0], [0]>} : vector<2x16x32xf32>, vector<2x16x32xf32>, vector<2x16x16xf32> -> vector<2x16x16xf32>
    "tpu.trace_stop"() : () -> ()
    %c0_21 = arith.constant 0 : index
    %c0_22 = arith.constant 0 : index
    %c0_23 = arith.constant 0 : index
    %25 = vector.load %arg10[%c0_21, %c0_22, %c0_23] : memref<2x16x1xf32, #tpu.memory_space<vmem>>, vector<2x16x1xf32>
    %cst_24 = arith.constant dense<0xFF800000> : vector<2x16xf32>
    %26 = vector.multi_reduction <maximumf>, %24, %cst_24 [2] : vector<2x16x16xf32> to vector<2x16xf32>
    %27 = vector.shape_cast %26 : vector<2x16xf32> to vector<2x16x1xf32>
    %28 = arith.maximumf %25, %27 : vector<2x16x1xf32>
    %c0_25 = arith.constant 0 : index
    %c0_26 = arith.constant 0 : index
    %c0_27 = arith.constant 0 : index
    %29 = vector.load %arg10[%c0_25, %c0_26, %c0_27] : memref<2x16x1xf32, #tpu.memory_space<vmem>>, vector<2x16x1xf32>
    %30 = arith.subf %29, %28 : vector<2x16x1xf32>
    %31 = math.exp %30 : vector<2x16x1xf32>
    %32 = vector.broadcast %28 : vector<2x16x1xf32> to vector<2x16x16xf32>
    %33 = arith.subf %24, %32 : vector<2x16x16xf32>
    %34 = math.exp %33 : vector<2x16x16xf32>
    %c0_28 = arith.constant 0 : index
    %c0_29 = arith.constant 0 : index
    %c0_30 = arith.constant 0 : index
    %35 = vector.load %arg11[%c0_28, %c0_29, %c0_30] : memref<2x16x1xf32, #tpu.memory_space<vmem>>, vector<2x16x1xf32>
    %36 = arith.mulf %31, %35 : vector<2x16x1xf32>
    %cst_31 = arith.constant dense<0.000000e+00> : vector<2x16xf32>
    %37 = vector.multi_reduction <add>, %34, %cst_31 [2] : vector<2x16x16xf32> to vector<2x16xf32>
    %38 = vector.shape_cast %37 : vector<2x16xf32> to vector<2x16x1xf32>
    %39 = arith.addf %36, %38 : vector<2x16x1xf32>
    %c0_32 = arith.constant 0 : index
    %c0_33 = arith.constant 0 : index
    %c0_34 = arith.constant 0 : index
    %40 = vector.load %arg11[%c0_32, %c0_33, %c0_34] : memref<2x16x1xf32, #tpu.memory_space<vmem>>, vector<2x16x1xf32>
    tpu.vector_store %arg11[%c0_32, %c0_33, %c0_34], %39 {strides = array<i32>} : memref<2x16x1xf32, #tpu.memory_space<vmem>>, vector<2x16x1xf32>,
    %c0_35 = arith.constant 0 : index
    %c0_36 = arith.constant 0 : index
    %c0_37 = arith.constant 0 : index
    %41 = vector.load %arg12[%c0_35, %c0_36, %c0_37] : memref<2x16x32xf32, #tpu.memory_space<vmem>>, vector<2x16x32xf32>
    %42 = vector.broadcast %31 : vector<2x16x1xf32> to vector<2x16x32xf32>
    %43 = arith.mulf %42, %41 : vector<2x16x32xf32>
    "tpu.trace_start"() <{level = 10 : i32, message = "bqk,bkd->bqd"}> : () -> ()
    %cst_38 = arith.constant dense<0.000000e+00> : vector<2x16x32xf32>
    %44 = tpu.matmul %34, %22, %cst_38 {dimension_numbers = #tpu.dot_dimension_numbers<[2], [1], [1], [2], [0, 0, 0, 1, 1, 2], [0], [0]>} : vector<2x16x16xf32>, vector<2x16x32xf32>, vector<2x16x32xf32> -> vector<2x16x32xf32>
    "tpu.trace_stop"() : () -> ()
    %45 = arith.addf %43, %44 : vector<2x16x32xf32>
    %c0_39 = arith.constant 0 : index
    %c0_40 = arith.constant 0 : index
    %c0_41 = arith.constant 0 : index
    %46 = vector.load %arg12[%c0_39, %c0_40, %c0_41] : memref<2x16x32xf32, #tpu.memory_space<vmem>>, vector<2x16x32xf32>
    tpu.vector_store %arg12[%c0_39, %c0_40, %c0_41], %45 {strides = array<i32>} : memref<2x16x32xf32, #tpu.memory_space<vmem>>, vector<2x16x32xf32>,
    %c0_42 = arith.constant 0 : index
    %c0_43 = arith.constant 0 : index
    %c0_44 = arith.constant 0 : index
    %47 = vector.load %arg10[%c0_42, %c0_43, %c0_44] : memref<2x16x1xf32, #tpu.memory_space<vmem>>, vector<2x16x1xf32>
    tpu.vector_store %arg10[%c0_42, %c0_43, %c0_44], %28 {strides = array<i32>} : memref<2x16x1xf32, #tpu.memory_space<vmem>>, vector<2x16x1xf32>,
    %c0_i32_45 = arith.constant 0 : i32
    %48 = arith.cmpi eq, %arg2, %c0_i32_45 : i32
    %49 = arith.extui %48 : i1 to i32
    %c0_i32_46 = arith.constant 0 : i32
    %50 = arith.cmpi ne, %49, %c0_i32_46 : i32
    scf.if %50 {
      %c0_47 = arith.constant 0 : index
      %c0_48 = arith.constant 0 : index
      %c0_49 = arith.constant 0 : index
      %51 = vector.load %arg11[%c0_47, %c0_48, %c0_49] : memref<2x16x1xf32, #tpu.memory_space<vmem>>, vector<2x16x1xf32>
      %cst_50 = arith.constant 1.000000e+00 : f32
      %52 = vector.broadcast %cst_50 : f32 to vector<2x16x1xf32>
      %53 = arith.divf %52, %51 : vector<2x16x1xf32>
      %c0_51 = arith.constant 0 : index
      %c0_52 = arith.constant 0 : index
      %c0_53 = arith.constant 0 : index
      %54 = vector.load %arg12[%c0_51, %c0_52, %c0_53] : memref<2x16x32xf32, #tpu.memory_space<vmem>>, vector<2x16x32xf32>
      %55 = vector.broadcast %53 : vector<2x16x1xf32> to vector<2x16x32xf32>
      %56 = arith.mulf %54, %55 : vector<2x16x32xf32>
      %c0_54 = arith.constant 0 : index
      %c0_55 = arith.constant 0 : index
      %c0_56 = arith.constant 0 : index
      %57 = vector.load %arg8[%c0_54, %c0_55, %c0_56] : memref<2x16x32xf32, #tpu.memory_space<vmem>>, vector<2x16x32xf32>
      tpu.vector_store %arg8[%c0_54, %c0_55, %c0_56], %56 {strides = array<i32>} : memref<2x16x32xf32, #tpu.memory_space<vmem>>, vector<2x16x32xf32>,
    } else {
    }
    return
  }
  func.func @transform_0(%arg0: i32, %arg1: i32, %arg2: i32) -> (i32, i32, i32) {
    %c0_i32 = arith.constant 0 : i32
    %c0_i32_0 = arith.constant 0 : i32
    return %arg0, %arg1, %c0_i32 : i32, i32, i32
  }
  func.func @transform_1(%arg0: i32, %arg1: i32, %arg2: i32) -> (i32, i32, i32) {
    %c0_i32 = arith.constant 0 : i32
    %c0_i32_0 = arith.constant 0 : i32
    return %arg0, %arg2, %c0_i32 : i32, i32, i32
  }
  func.func @transform_2(%arg0: i32, %arg1: i32, %arg2: i32) -> (i32, i32, i32) {
    %c0_i32 = arith.constant 0 : i32
    %c0_i32_0 = arith.constant 0 : i32
    return %arg0, %arg2, %c0_i32 : i32, i32, i32
  }
  func.func @transform_3(%arg0: i32, %arg1: i32, %arg2: i32) -> (i32, i32, i32) {
    %c0_i32 = arith.constant 0 : i32
    %c0_i32_0 = arith.constant 0 : i32
    %c0_i32_1 = arith.constant 0 : i32
    %c0_i32_2 = arith.constant 0 : i32
    return %c0_i32, %c0_i32_0, %c0_i32_1 : i32, i32, i32
  }
  func.func @transform_4(%arg0: i32, %arg1: i32, %arg2: i32) -> (i32, i32, i32) {
    %c0_i32 = arith.constant 0 : i32
    %c0_i32_0 = arith.constant 0 : i32
    %c0_i32_1 = arith.constant 0 : i32
    %c0_i32_2 = arith.constant 0 : i32
    return %c0_i32, %c0_i32_0, %c0_i32_1 : i32, i32, i32
  }
  func.func @transform_5(%arg0: i32, %arg1: i32, %arg2: i32) -> (i32, i32, i32) {
    %c0_i32 = arith.constant 0 : i32
    %c0_i32_0 = arith.constant 0 : i32
    return %arg0, %arg1, %c0_i32 : i32, i32, i32
  }
}

</mosaic_0001>

<bundles_post_ra>
// kernel: tpu_custom_call.1
= control target key start
LH: loop header
LB: loop body
LE: loop exit
PB: predicated region body
PF: predicated region fallthrough
CT: control target
= control target key end

     0   :  { %10 = vsyncpa [#allocation7], 0  ;;  %s1033_s0 = inlined_call_operand.hbm [shape: f32[2,16,32], index: 0, kind: input, shape index: {}]   ;;  %s1034_s1 = inlined_call_operand.hbm [shape: f32[2,16,32], index: 1, kind: input, shape index: {}]   ;;  %s1035_s2 = inlined_call_operand.hbm [shape: f32[2,16,32], index: 2, kind: input, shape index: {}]   ;;  %s1036_s3 = inlined_call_operand.hbm [shape: f32[3,32,32], index: 3, kind: input, shape index: {}]   ;;  %s1037_s4 = inlined_call_operand.vmem [shape: f32[3,1,32], index: 4, kind: input, shape index: {}]   ;;  %s1038_s5 = inlined_call_operand.hbm [shape: f32[2,16,32], index: 5, kind: output, shape index: {}]  }
   0x1   :  { %11 = vsyncpa [#allocation10], 0 }
   0x2   :  { %12 = vsyncpa [#allocation13], 0 }
   0x3   :  { %13 = vsyncpa [#allocation8], 0  ;;  %s31_s20 = sshll.u32 %s1034_s1, 4  ;;  %s858_s21 = smov [#allocation9]   ;;  %s32_s20 = int_to_ptr.hbm [resolvable:$true] %s31_s20 }
   0x4   :  { %s33_s22 = sshll.u32 %s858_s21, 4  ;;  %s18_s25 = sshll.u32 %s1033_s0, 4  ;;  %s34_s22 = int_to_ptr.vmem [resolvable:$true] %s33_s22  ;;  %s19_s25 = int_to_ptr.hbm [resolvable:$true] %s18_s25 }
   0x5   :  { %s859_s26 = smov 128   ;;  %s860_s27 = smov 8  }
   0x6   :  { %39 = dma.hbm_to_vmem [thread:$0]  %s32_s20, 512, %s34_s22, [#allocation10], %s859_s26, %s859_s26, %s860_s27  }
   0x7   :  { %s861_s28 = smov [#allocation6]   ;;  %s44_s1 = sshll.u32 %s1035_s2, 4  ;;  %s45_s1 = int_to_ptr.hbm [resolvable:$true] %s44_s1 }
   0x8   :  { %s20_s29 = sshll.u32 %s861_s28, 4  ;;  %s57_s8 = sshll.u32 %s1036_s3, 4  ;;  %s21_s29 = int_to_ptr.vmem [resolvable:$true] %s20_s29  ;;  %s58_s8 = int_to_ptr.hbm [resolvable:$true] %s57_s8 }
   0x9   :  { %26 = dma.hbm_to_vmem [thread:$0]  %s19_s25, 512, %s21_s29, [#allocation7], %s859_s26, %s859_s26, %s860_s27  }
   0xa   :  { %s862_s9 = smov [#allocation11]   ;;  %s863_s11 = smov [#allocation12]  }
   0xb   :  { %s46_s10 = sshll.u32 %s862_s9, 4  ;;  %s59_s2 = sshll.u32 %s863_s11, 4  ;;  %s47_s10 = int_to_ptr.vmem [resolvable:$true] %s46_s10  ;;  %s60_s2 = int_to_ptr.vmem [resolvable:$true] %s59_s2 }
   0xc   :  { %52 = dma.hbm_to_vmem [thread:$0]  %s45_s1, 512, %s47_s10, [#allocation10], %s859_s26, %s859_s26, %s860_s27  }
   0xd   :  { %65 = dma.hbm_to_vmem [thread:$0]  %s58_s8, 1536, %s60_s2, [#allocation13], %s859_s26, %s859_s26, %s860_s27  }
   0xe   :  { %850 = dma.done.wait [#allocation7], 512  }
   0xf   :  { %851 = vsyncadd [#allocation7], 4294966784 }
  0x10   :  { %852 = dma.done.wait [#allocation10], 1024  }
  0x11   :  { %853 = vsyncadd [#allocation10], 4294966272 }
  0x12   :  { %854 = dma.done.wait [#allocation13], 1536  }
  0x13   :  { %855 = vsyncadd [#allocation13], 4294965760  ;;  %v171_v0 = vld [vmem:[#allocation12 + $0x38] sm:$0xff]  ;;  %v170_v1 = vld [vmem:[#allocation12 + $0x30] sm:$0xff]  ;;  %vm100_vm0 = vcmask 261120   ;;  %vm146_vm1 = vcmask 7168  }
  0x14   :  { %202 = vmatpush.msra.mxu1 %v171_v0  ;;  %v95_v2 = vld [vmem:[#allocation12 + $0x18] sm:$0xff]  ;;  %686 = vmatpush.msra.mxu3 %v171_v0  ;;  %v169_v3 = vld [vmem:[#allocation12 + $0x28] sm:$0xff]  ;;  %v94_v4 = vld [vmem:[#allocation12 + $0x10] sm:$0xff]  ;;  %v864_v40 = vmov -inf   ;;  %vm348_vm2 = vcmask 130048   ;;  %v865_v55 = vmov 0  }
  0x15   :  { %125 = vmatpush.msra.mxu0 %v95_v2  ;;  %682 = vmatpush.msra.mxu2 %v95_v2  ;;  %v93_v5 = vld [vmem:[#allocation12 + $0x8] sm:$0xff]  ;;  %v168_v6 = vld [vmem:[#allocation12 + $0x20] sm:$0xff]  ;;  %v162_v10 = vld [vmem:[#allocation9 + $0x18] sm:$0xff]  ;;  %147 = vst.msk [vmem:[#allocation3] sm:$0xff] %vm146_vm1, %v864_v40  ;;  %v866_v56 = vmov 0.0   ;;  %s641_s20 = sshll.u32 %s1038_s5, 4  ;;  %s642_s20 = int_to_ptr.hbm [resolvable:$true] %s641_s20 }
  0x16   :  { %203 = vmatpush.msra.mxu1 %v170_v1  ;;  %687 = vmatpush.msra.mxu3 %v170_v1  ;;  %v159_v7 = vld [vmem:[#allocation9] sm:$0xff]  ;;  %v91_v11 = vld [vmem:[#allocation6 + $0x18] sm:$0xff]  ;;  %v160_v12 = vld [vmem:[#allocation9 + $0x8] sm:$0xff]  ;;  %148 = vst.msk [vmem:[#allocation3 + $0x8] sm:$0xff] %vm146_vm1, %v864_v40 }
  0x17   :  { %126 = vmatpush.msra.mxu0 %v94_v4  ;;  %683 = vmatpush.msra.mxu2 %v94_v4  ;;  %v92_v8 = vld [vmem:[#allocation12] sm:$0xff]  ;;  %v89_v13 = vld [vmem:[#allocation6 + $0x8] sm:$0xff]  ;;  %v161_v14 = vld [vmem:[#allocation9 + $0x10] sm:$0xff]  ;;  %149 = vst.msk [vmem:[#allocation3 + $0x10] sm:$0xff] %vm146_vm1, %v864_v40 }
  0x18   :  { %204 = vmatpush.msra.mxu1 %v169_v3  ;;  %v88_v9 = vld [vmem:[#allocation6] sm:$0xff]  ;;  %688 = vmatpush.msra.mxu3 %v169_v3  ;;  %v90_v15 = vld [vmem:[#allocation6 + $0x10] sm:$0xff]  ;;  %v223_v38 = vld [vmem:[#allocation12 + $0x58] sm:$0xff]  ;;  %150 = vst.msk [vmem:[#allocation3 + $0x18] sm:$0xff] %vm146_vm1, %v864_v40 }
  0x19   :  { %127 = vmatpush.msra.mxu0 %v93_v5  ;;  %684 = vmatpush.msra.mxu2 %v93_v5  ;;  %v704_v16 = vld [vmem:[%s1037_s4] ss:$0 sm:$0xff]  ;;  %v703_v20 = vld [vmem:[%s1037_s4 + $0x1] ss:$0 sm:$0xff]  ;;  %v222_v39 = vld [vmem:[#allocation12 + $0x50] sm:$0xff]  ;;  %151 = vst.msk [vmem:[#allocation4] sm:$0xff] %vm146_vm1, %v866_v56 }
  0x1a   :  { %205 = vmatpush.msra.mxu1 %v168_v6  ;;  %689 = vmatpush.msra.mxu3 %v168_v6  ;;  %v221_v41 = vld [vmem:[#allocation12 + $0x48] sm:$0xff]  ;;  %v220_v42 = vld [vmem:[#allocation12 + $0x40] sm:$0xff]  ;;  %v165_v49 = vld [vmem:[#allocation11 + $0x10] sm:$0xff]  ;;  %152 = vst.msk [vmem:[#allocation4 + $0x8] sm:$0xff] %vm146_vm1, %v866_v56 }
  0x1b   :  { %661 = vmatmul.msk.f32.vlgmr.msra.gmra.mxu1 %vm100_vm0, %v159_v7  ;;  %128 = vmatpush.msra.mxu0 %v92_v8  ;;  %v163_v43 = vld [vmem:[#allocation11] sm:$0xff]  ;;  %v164_v46 = vld [vmem:[#allocation11 + $0x8] sm:$0xff]  ;;  %v166_v52 = vld [vmem:[#allocation11 + $0x18] sm:$0xff]  ;;  %153 = vst.msk [vmem:[#allocation4 + $0x10] sm:$0xff] %vm146_vm1, %v866_v56 }
  0x1c   :  { %656 = vmatmul.msk.f32.vlgmr.msra.gmra.mxu0 %vm100_vm0, %v88_v9  ;;  %664 = vmatmul.msk.f32.vlgmr.msra.gmra.mxu3 %vm100_vm0, %v162_v10  ;;  %154 = vst.msk [vmem:[#allocation4 + $0x18] sm:$0xff] %vm146_vm1, %v866_v56  ;;  %v980_v57 = vld [vmem:[#allocation3] sm:$0xff] }
  0x1d   :  { %685 = vmatpush.msra.mxu2 %v92_v8  ;;  %700 = vset.pattern.permute.xlu2 %v865_v55  ;;  %155 = vst.msk [vmem:[#allocation5] sm:$0xff] %vm100_vm0, %v866_v56  ;;  %v345_v61 = vld [vmem:[#allocation3 + $0x8] sm:$0xff]  ;;  %v705_v10 = vld [vmem:[%s1037_s4 + $0x2] ss:$0 sm:$0xff]  ;;  %s867_s4 = smov [#allocation14]  }
  0x1e   :  { %659 = vmatmul.msk.f32.vlgmr.msra.gmra.mxu2 %vm100_vm0, %v91_v11  ;;  %701 = vset.pattern.permute.xlu0 %v865_v55  ;;  %156 = vst.msk [vmem:[#allocation5 + $0x8] sm:$0xff] %vm100_vm0, %v866_v56  ;;  %v991_v1 = vld [vmem:[#allocation3 + $0x10] sm:$0xff]  ;;  %s639_s17 = sshll.u32 %s867_s4, 4  ;;  %s640_s17 = int_to_ptr.vmem [resolvable:$true] %s639_s17 }
  0x1f   :  { %253 = vmatpush.msrb.mxu2 %v223_v38  ;;  %702 = vset.pattern.permute.xlu1 %v865_v55  ;;  %157 = vst.msk [vmem:[#allocation5 + $0x10] sm:$0xff] %vm100_vm0, %v866_v56  ;;  %v347_v5 = vld [vmem:[#allocation3 + $0x18] sm:$0xff] }
  0x20   :  { %158 = vst.msk [vmem:[#allocation5 + $0x18] sm:$0xff] %vm100_vm0, %v866_v56 }
  0x21   :  { %254 = vmatpush.msrb.mxu2 %v222_v39 }
  0x23   :  { %662 = vmatmul.msk.f32.gmra.mxu1 %vm100_vm0, %v160_v12  ;;  %255 = vmatpush.msrb.mxu2 %v221_v41 }
  0x24   :  { %657 = vmatmul.msk.f32.gmra.mxu0 %vm100_vm0, %v89_v13 }
  0x25   :  { %256 = vmatpush.msrb.mxu2 %v220_v42 }
  0x26   :  { %666 = vmatmul.msk.f32.vlgmr.msrb.gmra.mxu2 %vm100_vm0, %v163_v43 }
  0x2b   :  { %663 = vmatmul.msk.f32.gmra.mxu1 %vm100_vm0, %v161_v14 }
  0x2c   :  { %658 = vmatmul.msk.f32.gmra.mxu0 %vm100_vm0, %v90_v15 }
  0x2e   :  { %667 = vmatmul.msk.f32.gmra.mxu2 %vm100_vm0, %v164_v46  ;;  %v409_v46 = vld [vmem:[#allocation4] sm:$0xff] }
  0x36   :  { %668 = vmatmul.msk.f32.gmra.mxu2 %vm100_vm0, %v165_v49 }
  0x3e   :  { %669 = vmatmul.msk.f32.gmra.mxu2 %vm100_vm0, %v166_v52 }
  0x98   :  { %v207_v17 = vpop.f32.mrf.mxu1 }
  0x99   :  { %v130_v18 = vpop.f32.mrf.mxu0  ;;  %v208_v29 = vadd.f32 %v703_v20, %v207_v17 }
  0x9a   :  { %v131_v19 = vadd.f32 %v704_v16, %v130_v18 }
  0x9c   :  { %142 = vst.msk [vmem:[#allocation2] sm:$0xff] %vm100_vm0, %v131_v19 }
  0x9f   :  { %v216_v22 = vpop.f32.mrf.mxu3 }
  0xa0   :  { %v210_v21 = vpop.f32.mrf.mxu1  ;;  %v217_v28 = vadd.f32 %v703_v20, %v216_v22 }
  0xa1   :  { %v211_v23 = vadd.f32 %v703_v20, %v210_v21  ;;  %v133_v24 = vpop.f32.mrf.mxu0  ;;  %v139_v25 = vpop.f32.mrf.mxu2 }
  0xa2   :  { %v134_v26 = vadd.f32 %v704_v16, %v133_v24  ;;  %v140_v27 = vadd.f32 %v704_v16, %v139_v25 }
  0xa3   :  { %670 = vmatpush.xpose.msk.msrb.mxu3 %vm100_vm0, %v211_v23  ;;  %v270_v30 = vld [vmem:[#allocation2] sm:$0xff] }
  0xa4   :  { %143 = vst.msk [vmem:[#allocation2 + $0x8] sm:$0xff] %vm100_vm0, %v134_v26 }
  0xa5   :  { %145 = vst.msk [vmem:[#allocation2 + $0x18] sm:$0xff] %vm100_vm0, %v140_v27 }
  0xa7   :  { %671 = vmatpush.xpose.msk.msrb.mxu3 %vm100_vm0, %v208_v29 }
  0xa8   :  { %v213_v31 = vpop.f32.mrf.mxu1 }
  0xa9   :  { %v136_v32 = vpop.f32.mrf.mxu0  ;;  %v214_v33 = vadd.f32 %v703_v20, %v213_v31  ;;  %v258_v9 = vpop.f32.mrf.mxu2 }
  0xaa   :  { %672 = vmatmul.msk.f32.vlgmr.msrb.gmra.mxu3 %vm100_vm0, %v270_v30  ;;  %v137_v34 = vadd.f32 %v704_v16, %v136_v32  ;;  %v259_v12 = vadd.f32 %v705_v10, %v258_v9 }
  0xab   :  { %674 = vmatpush.xpose.msk.msra.mxu3 %vm100_vm0, %v217_v28  ;;  %v271_v35 = vld [vmem:[#allocation2 + $0x8] sm:$0xff] }
  0xac   :  { %144 = vst.msk [vmem:[#allocation2 + $0x10] sm:$0xff] %vm100_vm0, %v137_v34  ;;  %v273_v37 = vld [vmem:[#allocation2 + $0x18] sm:$0xff] }
  0xaf   :  { %675 = vmatpush.xpose.msk.msra.mxu3 %vm100_vm0, %v214_v33 }
  0xb1   :  { %v261_v11 = vpop.f32.mrf.mxu2 }
  0xb2   :  { %673 = vmatmul.msk.f32.gmra.mxu3 %vm100_vm0, %v271_v35  ;;  %v262_v13 = vadd.f32 %v705_v10, %v261_v11 }
  0xb3   :  { %v272_v36 = vld [vmem:[#allocation2 + $0x10] sm:$0xff] }
  0xb4   :  { %486 = vmatpush.msrb.mxu0 %v262_v13 }
  0xb6   :  { %487 = vmatpush.msrb.mxu0 %v259_v12 }
  0xb9   :  { %v264_v14 = vpop.f32.mrf.mxu2 }
  0xba   :  { %676 = vmatmul.msk.f32.vlgmr.msra.gmra.mxu3 %vm100_vm0, %v272_v36  ;;  %v265_v16 = vadd.f32 %v705_v10, %v264_v14 }
  0xc1   :  { %v267_v15 = vpop.f32.mrf.mxu2 }
  0xc2   :  { %677 = vmatmul.msk.f32.gmra.mxu3 %vm100_vm0, %v273_v37  ;;  %v268_v17 = vadd.f32 %v705_v10, %v267_v15 }
  0xc4   :  { %515 = vmatpush.msrb.mxu1 %v268_v17  ;;  %v412_v17 = vld [vmem:[#allocation4 + $0x18] sm:$0xff] }
  0xc6   :  { %516 = vmatpush.msrb.mxu1 %v265_v16 }
 0x12d   :  { %v952_v44 = vpop.f32.mrf.mxu3 }
 0x12e   :  { %v349_v45 = vsel %vm348_vm2, %v952_v44, -inf }
 0x12f   :  { %350 = vmax.xlane.f32.xlu0 %v349_v45 }
 0x135   :  { %v957_v47 = vpop.f32.mrf.mxu3 }
 0x136   :  { %v352_v48 = vsel %vm348_vm2, %v957_v47, -inf }
 0x137   :  { %353 = vmax.xlane.f32.xlu1 %v352_v48 }
 0x13d   :  { %v962_v50 = vpop.f32.mrf.mxu3 }
 0x13e   :  { %v355_v51 = vsel %vm348_vm2, %v962_v50, -inf }
 0x13f   :  { %356 = vmax.xlane.f32.xlu0 %v355_v51  ;;  %v411_v51 = vld [vmem:[#allocation4 + $0x10] sm:$0xff] }
 0x145   :  { %v967_v53 = vpop.f32.mrf.mxu3 }
 0x146   :  { %v358_v54 = vsel %vm348_vm2, %v967_v53, -inf }
 0x147   :  { %359 = vmax.xlane.f32.xlu1 %v358_v54 }
 0x1a2   :  { %v351_v58 = vpop.xlane.xlu0 %350 }
 0x1a3   :  { %v983_v59 = vmax.f32 %v980_v57, %v351_v58 }
 0x1a5   :  { %v365_v60 = vsub.f32 %v980_v57, %v983_v59  ;;  %532 = vst.msk [vmem:[#allocation3] sm:$0xff] %vm146_vm1, %v983_v59  ;;  %379 = vperm.xlu2 %700, %v983_v59  }
 0x1a7   :  { %v369_v40 = vmul.f32 1.442695, %v365_v60 }
 0x1aa   :  { %v354_v62 = vpop.xlane.xlu1 %353 }
 0x1ab   :  { %v362_v63 = vmax.f32 %v345_v61, %v354_v62 }
 0x1ad   :  { %v366_v0 = vsub.f32 %v345_v61, %v362_v63  ;;  %533 = vst.msk [vmem:[#allocation3 + $0x8] sm:$0xff] %vm146_vm1, %v362_v63  ;;  %384 = vperm.xlu0 %701, %v362_v63  }
 0x1af   :  { %v371_v37 = vmul.f32 1.442695, %v366_v0 }
 0x1b2   :  { %v357_v2 = vpop.xlane.xlu0 %356 }
 0x1b3   :  { %v363_v3 = vmax.f32 %v991_v1, %v357_v2  ;;  %v410_v2 = vld [vmem:[#allocation4 + $0x8] sm:$0xff] }
 0x1b5   :  { %v367_v4 = vsub.f32 %v991_v1, %v363_v3  ;;  %534 = vst.msk [vmem:[#allocation3 + $0x10] sm:$0xff] %vm146_vm1, %v363_v3  ;;  %389 = vperm.xlu2 %700, %v363_v3  }
 0x1b7   :  { %v373_v41 = vmul.f32 1.442695, %v367_v4 }
 0x1ba   :  { %v360_v6 = vpop.xlane.xlu1 %359 }
 0x1bb   :  { %v364_v7 = vmax.f32 %v347_v5, %v360_v6 }
 0x1bd   :  { %v368_v8 = vsub.f32 %v347_v5, %v364_v7  ;;  %535 = vst.msk [vmem:[#allocation3 + $0x18] sm:$0xff] %vm146_vm1, %v364_v7  ;;  %394 = vperm.xlu1 %702, %v364_v7  }
 0x1bf   :  { %v375_v43 = vmul.f32 1.442695, %v368_v8 }
 0x1ff   :  { %v380_v18 = vpop.permute.xlu2 %379 }
 0x200   :  { %v397_v19 = vsub.f32 %v952_v44, %v380_v18 }
 0x202   :  { %v401_v20 = vmul.f32 1.442695, %v397_v19 }
 0x204   :  { %706 = vpow2.f32 %v401_v20 }
 0x20a   :  { %v707_v21 = vpop.eup %706 }
 0x20b   :  { %678 = vmatmul.msk.f32.vlgmr.msrb.gmra.mxu0 %vm348_vm2, %v707_v21  ;;  %v417_v22 = vsel %vm348_vm2, %v707_v21, 0.0 }
 0x20c   :  { %418 = vadd.xlane.f32.xlu2 %v417_v22 }
 0x20f   :  { %v390_v23 = vpop.permute.xlu2 %389 }
 0x210   :  { %v399_v24 = vsub.f32 %v962_v50, %v390_v23 }
 0x212   :  { %v405_v25 = vmul.f32 1.442695, %v399_v24 }
 0x214   :  { %708 = vpow2.f32 %v405_v25 }
 0x21a   :  { %v709_v26 = vpop.eup %708 }
 0x21b   :  { %680 = vmatmul.msk.f32.vlgmr.msrb.gmra.mxu1 %vm348_vm2, %v709_v26  ;;  %v423_v27 = vsel %vm348_vm2, %v709_v26, 0.0  ;;  %v438_v26 = vld [vmem:[#allocation5] sm:$0xff] }
 0x21c   :  { %424 = vadd.xlane.f32.xlu0 %v423_v27  ;;  %v439_v27 = vld [vmem:[#allocation5 + $0x8] sm:$0xff] }
 0x21f   :  { %v385_v28 = vpop.permute.xlu0 %384 }
 0x220   :  { %v398_v29 = vsub.f32 %v957_v47, %v385_v28 }
 0x222   :  { %v403_v30 = vmul.f32 1.442695, %v398_v29 }
 0x224   :  { %710 = vpow2.f32 %v403_v30 }
 0x22a   :  { %v711_v31 = vpop.eup %710 }
 0x22b   :  { %679 = vmatmul.msk.f32.gmra.mxu0 %vm348_vm2, %v711_v31  ;;  %v420_v32 = vsel %vm348_vm2, %v711_v31, 0.0 }
 0x22c   :  { %421 = vadd.xlane.f32.xlu1 %v420_v32 }
 0x22f   :  { %v395_v33 = vpop.permute.xlu1 %394 }
 0x230   :  { %v400_v34 = vsub.f32 %v967_v53, %v395_v33 }
 0x232   :  { %v407_v35 = vmul.f32 1.442695, %v400_v34 }
 0x234   :  { %712 = vpow2.f32 %v407_v35 }
 0x235   :  { %714 = vpow2.f32 %v371_v37 }
 0x236   :  { %716 = vpow2.f32 %v369_v40 }
 0x237   :  { %718 = vpow2.f32 %v373_v41 }
 0x238   :  { %720 = vpow2.f32 %v375_v43 }
 0x23a   :  { %v713_v36 = vpop.eup %712 }
 0x23b   :  { %681 = vmatmul.msk.f32.gmra.mxu1 %vm348_vm2, %v713_v36  ;;  %v426_v38 = vsel %vm348_vm2, %v713_v36, 0.0  ;;  %v715_v39 = vpop.eup %714 }
 0x23c   :  { %427 = vadd.xlane.f32.xlu2 %v426_v38  ;;  %v717_v42 = vpop.eup %716  ;;  %v414_v3 = vmul.f32 %v715_v39, %v410_v2 }
 0x23d   :  { %v719_v44 = vpop.eup %718  ;;  %v413_v47 = vmul.f32 %v717_v42, %v409_v46 }
 0x23e   :  { %v721_v45 = vpop.eup %720  ;;  %v415_v52 = vmul.f32 %v719_v44, %v411_v51  ;;  %v441_v51 = vld [vmem:[#allocation5 + $0x18] sm:$0xff] }
 0x23f   :  { %v416_v18 = vmul.f32 %v721_v45, %v412_v17 }
 0x245   :  { %449 = vperm.xlu1 %702, %v715_v39  }
 0x254   :  { %444 = vperm.xlu2 %700, %v717_v42   ;;  %v440_v42 = vld [vmem:[#allocation5 + $0x10] sm:$0xff] }
 0x25c   :  { %454 = vperm.xlu2 %700, %v719_v44  }
 0x264   :  { %459 = vperm.xlu2 %700, %v721_v45  }
 0x27f   :  { %v419_v48 = vpop.xlane.xlu2 %418 }
 0x280   :  { %v429_v49 = vadd.f32 %v419_v48, %v413_v47 }
 0x282   :  { %434 = vst.msk [vmem:[#allocation4] sm:$0xff] %vm146_vm1, %v429_v49 }
 0x288   :  { %v489_v22 = vpop.f32.mrf.mxu0 }
 0x289   :  { %v539_v50 = vld [vmem:[#allocation4] sm:$0xff] }
 0x28a   :  { %722 = vrcp.f32 %v539_v50  ;;  %v554_v58 = vand.u32 2147483648, %v539_v50  ;;  %v552_v60 = vand.u32 2147483647, %v539_v50  ;;  %vm548_vm4 = vweird.f32 %v539_v50 }
 0x28c   :  { %v555_v62 = vor.u32 1.1754944e-38, %v554_v58  ;;  %vm553_vm6 = vcmp.eq.f32.partialorder %v552_v60, 8.507059e+37 }
 0x28f   :  { %v425_v53 = vpop.xlane.xlu0 %424 }
 0x290   :  { %v723_v54 = vpop.eup %722  ;;  %v431_v55 = vadd.f32 %v425_v53, %v415_v52 }
 0x291   :  { %v544_v56 = vmul.f32 %v723_v54, %v539_v50  ;;  %vm549_vm3 = vweird.f32 %v723_v54 }
 0x292   :  { %436 = vst.msk [vmem:[#allocation4 + $0x10] sm:$0xff] %vm146_vm1, %v431_v55  ;;  %vm550_vm5 = vmor %vm548_vm4, %vm549_vm3 }
 0x293   :  { %v545_v57 = vsub.f32 1.0, %v544_v56 }
 0x295   :  { %v546_v59 = vmul.f32 %v723_v54, %v545_v57 }
 0x297   :  { %v547_v61 = vadd.f32 %v723_v54, %v546_v59 }
 0x298   :  { %v518_v46 = vpop.f32.mrf.mxu1 }
 0x299   :  { %v551_v63 = vsel %vm550_vm5, %v723_v54, %v547_v61  ;;  %v541_v0 = vld [vmem:[#allocation4 + $0x10] sm:$0xff] }
 0x29a   :  { %v556_v1 = vsel %vm553_vm6, %v555_v62, %v551_v63  ;;  %724 = vrcp.f32 %v541_v0  ;;  %v584_v9 = vand.u32 2147483648, %v541_v0  ;;  %v582_v11 = vand.u32 2147483647, %v541_v0 }
 0x29b   :  { %609 = vperm.xlu0 %701, %v556_v1   ;;  %vm578_vm8 = vweird.f32 %v541_v0 }
 0x29c   :  { %v585_v13 = vor.u32 1.1754944e-38, %v584_v9  ;;  %vm583_vm10 = vcmp.eq.f32.partialorder %v582_v11, 8.507059e+37 }
 0x29f   :  { %v422_v4 = vpop.xlane.xlu1 %421 }
 0x2a0   :  { %v725_v5 = vpop.eup %724  ;;  %v430_v6 = vadd.f32 %v422_v4, %v414_v3 }
 0x2a1   :  { %v574_v7 = vmul.f32 %v725_v5, %v541_v0  ;;  %vm579_vm7 = vweird.f32 %v725_v5 }
 0x2a2   :  { %435 = vst.msk [vmem:[#allocation4 + $0x8] sm:$0xff] %vm146_vm1, %v430_v6  ;;  %vm580_vm9 = vmor %vm578_vm8, %vm579_vm7 }
 0x2a3   :  { %v575_v8 = vsub.f32 1.0, %v574_v7 }
 0x2a5   :  { %v576_v10 = vmul.f32 %v725_v5, %v575_v8 }
 0x2a7   :  { %v577_v12 = vadd.f32 %v725_v5, %v576_v10 }
 0x2a8   :  { %v492_v36 = vpop.f32.mrf.mxu0 }
 0x2a9   :  { %v581_v14 = vsel %vm580_vm9, %v725_v5, %v577_v12  ;;  %v540_v15 = vld [vmem:[#allocation4 + $0x8] sm:$0xff] }
 0x2aa   :  { %v586_v16 = vsel %vm583_vm10, %v585_v13, %v581_v14  ;;  %726 = vrcp.f32 %v540_v15  ;;  %v569_v25 = vand.u32 2147483648, %v540_v15  ;;  %v567_v29 = vand.u32 2147483647, %v540_v15 }
 0x2ab   :  { %619 = vperm.xlu1 %702, %v586_v16   ;;  %vm563_vm12 = vweird.f32 %v540_v15 }
 0x2ac   :  { %v570_v35 = vor.u32 1.1754944e-38, %v569_v25  ;;  %vm568_vm14 = vcmp.eq.f32.partialorder %v567_v29, 8.507059e+37 }
 0x2af   :  { %v428_v19 = vpop.xlane.xlu2 %427 }
 0x2b0   :  { %v727_v20 = vpop.eup %726  ;;  %v432_v21 = vadd.f32 %v428_v19, %v416_v18 }
 0x2b1   :  { %v559_v23 = vmul.f32 %v727_v20, %v540_v15  ;;  %vm564_vm11 = vweird.f32 %v727_v20 }
 0x2b2   :  { %437 = vst.msk [vmem:[#allocation4 + $0x18] sm:$0xff] %vm146_vm1, %v432_v21  ;;  %vm565_vm13 = vmor %vm563_vm12, %vm564_vm11 }
 0x2b3   :  { %v560_v24 = vsub.f32 1.0, %v559_v23 }
 0x2b5   :  { %v561_v28 = vmul.f32 %v727_v20, %v560_v24 }
 0x2b7   :  { %v445_v30 = vpop.permute.xlu2 %444  ;;  %v450_v31 = vpop.permute.xlu1 %449  ;;  %v562_v32 = vadd.f32 %v727_v20, %v561_v28 }
 0x2b8   :  { %v462_v33 = vmul.f32 %v445_v30, %v438_v26  ;;  %v463_v34 = vmul.f32 %v450_v31, %v439_v27  ;;  %v521_v58 = vpop.f32.mrf.mxu1 }
 0x2b9   :  { %v566_v37 = vsel %vm565_vm13, %v727_v20, %v562_v32  ;;  %v542_v38 = vld [vmem:[#allocation4 + $0x18] sm:$0xff] }
 0x2ba   :  { %v524_v39 = vadd.f32 %v489_v22, %v462_v33  ;;  %v525_v40 = vadd.f32 %v492_v36, %v463_v34  ;;  %v571_v41 = vsel %vm568_vm14, %v570_v35, %v566_v37  ;;  %728 = vrcp.f32 %v542_v38 }
 0x2bb   :  { %614 = vperm.xlu2 %700, %v571_v41   ;;  %v599_v50 = vand.u32 2147483648, %v542_v38  ;;  %v597_v53 = vand.u32 2147483647, %v542_v38  ;;  %vm593_vm1 = vweird.f32 %v542_v38 }
 0x2bc   :  { %528 = vst.msk [vmem:[#allocation5] sm:$0xff] %vm100_vm0, %v524_v39 }
 0x2bd   :  { %529 = vst.msk [vmem:[#allocation5 + $0x8] sm:$0xff] %vm100_vm0, %v525_v40  ;;  %v600_v57 = vor.u32 1.1754944e-38, %v599_v50  ;;  %vm598_vm3 = vcmp.eq.f32.partialorder %v597_v53, 8.507059e+37 }
 0x2bf   :  { %v455_v43 = vpop.permute.xlu2 %454 }
 0x2c0   :  { %v729_v44 = vpop.eup %728  ;;  %v464_v45 = vmul.f32 %v455_v43, %v440_v42 }
 0x2c1   :  { %v589_v47 = vmul.f32 %v729_v44, %v542_v38  ;;  %vm594_vm15 = vweird.f32 %v729_v44 }
 0x2c2   :  { %v526_v48 = vadd.f32 %v518_v46, %v464_v45  ;;  %vm595_vm2 = vmor %vm593_vm1, %vm594_vm15 }
 0x2c3   :  { %v590_v49 = vsub.f32 1.0, %v589_v47  ;;  %v603_v63 = vld [vmem:[#allocation5] sm:$0xff] }
 0x2c4   :  { %530 = vst.msk [vmem:[#allocation5 + $0x10] sm:$0xff] %vm100_vm0, %v526_v48  ;;  %v604_v1 = vld [vmem:[#allocation5 + $0x8] sm:$0xff] }
 0x2c5   :  { %v591_v52 = vmul.f32 %v729_v44, %v590_v49 }
 0x2c7   :  { %v460_v54 = vpop.permute.xlu2 %459  ;;  %v592_v55 = vadd.f32 %v729_v44, %v591_v52 }
 0x2c8   :  { %v465_v56 = vmul.f32 %v460_v54, %v441_v51 }
 0x2c9   :  { %v596_v59 = vsel %vm595_vm2, %v729_v44, %v592_v55 }
 0x2ca   :  { %v527_v60 = vadd.f32 %v521_v58, %v465_v56  ;;  %v601_v61 = vsel %vm598_vm3, %v600_v57, %v596_v59 }
 0x2cb   :  { %624 = vperm.xlu2 %700, %v601_v61   ;;  %v605_v4 = vld [vmem:[#allocation5 + $0x10] sm:$0xff] }
 0x2cc   :  { %531 = vst.msk [vmem:[#allocation5 + $0x18] sm:$0xff] %vm100_vm0, %v527_v60 }
 0x2d3   :  { %v606_v7 = vld [vmem:[#allocation5 + $0x18] sm:$0xff] }
 0x30d   :  { %v610_v62 = vpop.permute.xlu0 %609 }
 0x30e   :  { %v627_v0 = vmul.f32 %v610_v62, %v603_v63 }
 0x310   :  { %631 = vst.msk [vmem:[#allocation14] sm:$0xff] %vm100_vm0, %v627_v0 }
 0x315   :  { %v615_v2 = vpop.permute.xlu2 %614 }
 0x316   :  { %v628_v3 = vmul.f32 %v615_v2, %v604_v1 }
 0x318   :  { %632 = vst.msk [vmem:[#allocation14 + $0x8] sm:$0xff] %vm100_vm0, %v628_v3 }
 0x31d   :  { %v620_v5 = vpop.permute.xlu1 %619 }
 0x31e   :  { %v629_v6 = vmul.f32 %v620_v5, %v605_v4 }
 0x320   :  { %633 = vst.msk [vmem:[#allocation14 + $0x10] sm:$0xff] %vm100_vm0, %v629_v6 }
 0x325   :  { %v625_v8 = vpop.permute.xlu2 %624 }
 0x326   :  { %v630_v9 = vmul.f32 %v625_v8, %v606_v7 }
 0x328   :  { %634 = vst.msk [vmem:[#allocation14 + $0x18] sm:$0xff] %vm100_vm0, %v630_v9 }
 0x329   :  { %647 = dma.vmem_to_hbm [thread:$0]  %s640_s17, 512, %s642_s20, [#allocation8], %s859_s26, %s859_s26, %s860_s27  }
 0x32a   :  { %856 = dma.done.wait [#allocation8], 512  }
 0x32b   :  { %857 = vsyncadd [#allocation8], 4294966784 }
 0x32c   :  { %652 = vsyncpa [#allocation7], 1 }
 0x32d   :  { %653 = vsyncpa [#allocation10], 1 }
 0x32e   :  { %654 = vsyncpa [#allocation13], 1 }
 0x32f   :  { %655 = vsyncpa [#allocation8], 1 }

</bundles_post_ra>
